<compile_context>
chip_gen: v7x
topology: tpu7x:2x2x1
jax: 0.10.0
libtpu: 0.0.40
codegen_flags: <defaults>
</compile_context>

<pallas_src>
import functools

import jax
import jax.numpy as jnp
from jax import lax
from jax.experimental import pallas as pl
from jax.experimental.pallas import tpu as pltpu

DIM = 32             # d_model (must be divisible by nhead)
NHEAD = 4
HEAD_DIM = DIM // NHEAD
FF = DIM             # dim_feedforward = dim (matches the module)
EPS = 1e-5           # PyTorch LayerNorm default eps

# ---- layout of the packed tail-weight array (lanes padded to 128) ----
PACK_LANES = 128
_R_WQKV = 0                       # rows [0, DIM)       lanes [0, 3*DIM)
_R_WOUT = DIM                     # rows [DIM, 2*DIM)   lanes [0, DIM)
_R_W1 = 2 * DIM                   # rows [2*DIM, 3*DIM) lanes [0, FF)
_R_W2 = 3 * DIM                   # rows [3*DIM, 4*DIM) lanes [0, DIM)
_R_BIAS = 4 * DIM                 # 9 bias / scale rows follow
(_B_BPOOL, _B_BQKV, _B_BOUT, _B_G1, _B_BE1,
 _B_BL1, _B_BL2, _B_G2, _B_BE2) = range(9)
PACK_ROWS = ((4 * DIM + 9 + 7) // 8) * 8


def _round_up(a, m):
    return ((a + m - 1) // m) * m


def _layernorm(x, gamma, beta):
    mu = jnp.mean(x, axis=-1, keepdims=True)
    var = jnp.mean((x - mu) ** 2, axis=-1, keepdims=True)
    return (x - mu) * lax.rsqrt(var + EPS) * gamma + beta


def _vmem_capacity_bytes():
    """Per-core VMEM capacity; conservative (v7x-sized) default if the query fails."""
    try:
        cap = int(getattr(pltpu.get_tpu_info(), "vmem_capacity_bytes", 0))
        if cap >= (32 << 20):
            return cap
    except Exception:
        pass
    return 64 << 20


def batchformer_kernel(
    x_ref,            # (B, C, T_hw)   streamed spatial tile of the feature map
    wpool_ref,        # (C, DIM)       pool_layer weight, (in, out)
    pack_ref,         # (PACK_ROWS, PACK_LANES) packed tail weights/biases
    out_ref,          # (2, B, DIM)    [pre ; feature]
    acc_ref,          # (B, C, T_hw)   f32 running spatial sum (full-width: pure VPU add)
    *, hw, t_hw, ragged, inv_hw,
):
    i = pl.program_id(0)

    @pl.when(i == 0)
    def _init():
        acc_ref[...] = jnp.zeros_like(acc_ref)

    # ---- streamed spatial sum (the 1/(H*W) scale is folded into the finalize) ----
    xv = x_ref[...].astype(jnp.float32)
    if ragged:
        # cdiv grid: the last tile extends past HW; out-of-bounds lanes are undefined,
        # select them to zero (select, not multiply, so garbage NaNs cannot leak).
        lane = lax.broadcasted_iota(jnp.int32, xv.shape, xv.ndim - 1)
        rem = hw - i * t_hw
        xv = jnp.where(lane < rem, xv, 0.0)
    acc_ref[...] += xv

    @pl.when(i == pl.num_programs(0) - 1)
    def _finalize():
        def brow(k):  # one (1, DIM) bias / scale row from the pack
            r = _R_BIAS + k
            return pack_ref[r:r + 1, 0:DIM]

        # single lane reduce of the accumulator; mean-pool fused with pool_layer
        pooled = jnp.sum(acc_ref[...], axis=-1) * inv_hw                       # (B, C)
        pre = jnp.dot(pooled, wpool_ref[...],
                      preferred_element_type=jnp.float32) + brow(_B_BPOOL)     # (B, DIM)

        feat = pre  # sequence of length B, batch 1 -> attention mixes across the batch

        # ---- multi-head self-attention: one qkv matmul, per-head only for (B,B) ----
        wqkv = pack_ref[_R_WQKV:_R_WQKV + DIM, 0:3 * DIM]
        bqkv = pack_ref[_R_BIAS + _B_BQKV:_R_BIAS + _B_BQKV + 1, 0:3 * DIM]
        qkv = jnp.dot(feat, wqkv, preferred_element_type=jnp.float32) + bqkv   # (B, 3*DIM)

        scale = 1.0 / (HEAD_DIM ** 0.5)
        heads = []
        for h in range(NHEAD):                                                 # static unroll
            q = qkv[:, h * HEAD_DIM:(h + 1) * HEAD_DIM]
            k = qkv[:, DIM + h * HEAD_DIM:DIM + (h + 1) * HEAD_DIM]
            v = qkv[:, 2 * DIM + h * HEAD_DIM:2 * DIM + (h + 1) * HEAD_DIM]
            s = lax.dot_general(q, k, (((1,), (1,)), ((), ())),
                                preferred_element_type=jnp.float32) * scale    # (B, B)
            s = s - jnp.max(s, axis=-1, keepdims=True)
            p = jnp.exp(s)
            p = p / jnp.sum(p, axis=-1, keepdims=True)
            heads.append(jnp.dot(p, v, preferred_element_type=jnp.float32))    # (B, HD)

        wout = pack_ref[_R_WOUT:_R_WOUT + DIM, 0:DIM]
        attn = jnp.dot(jnp.concatenate(heads, axis=-1), wout,
                       preferred_element_type=jnp.float32) + brow(_B_BOUT)     # (B, DIM)

        # residual + LayerNorm1 (dropout applied as identity)
        src = _layernorm(feat + attn, brow(_B_G1), brow(_B_BE1))

        # ---- feed-forward: linear2(relu(linear1(src))) ----
        w1 = pack_ref[_R_W1:_R_W1 + DIM, 0:FF]
        w2 = pack_ref[_R_W2:_R_W2 + FF, 0:DIM]
        h1 = jnp.maximum(
            jnp.dot(src, w1, preferred_element_type=jnp.float32) + brow(_B_BL1), 0.0)
        h2 = jnp.dot(h1, w2, preferred_element_type=jnp.float32) + brow(_B_BL2)

        # residual + LayerNorm2
        src = _layernorm(src + h2, brow(_B_G2), brow(_B_BE2))

        # single combined store: torch.cat([pre, feature], dim=0) as a (2, B, DIM) block
        out_ref[...] = jnp.stack([pre, src], axis=0).astype(out_ref.dtype)


def _pack_tail_weights(params):
    """Collapse the 13 tiny tail weights/biases into one lane-padded f32 array."""
    (wpool, bpool, wqkv, bqkv, wout, bout, g1, be1,
     w1, bl1, w2, bl2, g2, be2) = params
    del wpool
    pack = jnp.zeros((PACK_ROWS, PACK_LANES), jnp.float32)
    pack = pack.at[_R_WQKV:_R_WQKV + DIM, 0:3 * DIM].set(wqkv)
    pack = pack.at[_R_WOUT:_R_WOUT + DIM, 0:DIM].set(wout)
    pack = pack.at[_R_W1:_R_W1 + DIM, 0:FF].set(w1)
    pack = pack.at[_R_W2:_R_W2 + FF, 0:DIM].set(w2)
    bias_rows = [(_B_BPOOL, bpool), (_B_BQKV, bqkv), (_B_BOUT, bout), (_B_G1, g1),
                 (_B_BE1, be1), (_B_BL1, bl1), (_B_BL2, bl2), (_B_G2, g2), (_B_BE2, be2)]
    for k, v in bias_rows:
        pack = pack.at[_R_BIAS + k, 0:v.shape[-1]].set(v[0])
    return pack


def batchformer_forward(x, params, *, max_block_bytes=8 * 1024 * 1024):
    """x: (B, C, H, W) float32 or bfloat16.  Returns (2*B, DIM) float32."""
    B, C, H, W = x.shape
    HW = H * W
    wpool = params[0]
    pack = _pack_tail_weights(params)

    x3 = x.reshape(B, C, HW)
    itemsize = x.dtype.itemsize

    # ---- generation-aware VMEM budget (v7x: 64 MiB physical; v5e/v6e: 128 MiB) ----
    cap = _vmem_capacity_bytes()
    usable = min(cap * 3 // 4, cap - (16 << 20))

    sublane = 8 * max(1, 4 // itemsize)        # f32 -> 8, bf16 -> 16 sublanes per vreg
    rows_in = B * _round_up(C, sublane)        # sublane-padded rows of one streamed block
    rows_acc = B * _round_up(C, 8)             # f32 accumulator rows
    small_bytes = _round_up(C, 8) * 128 * 4 + PACK_ROWS * PACK_LANES * 4
    out_bytes = 2 * _round_up(B, 8) * 128 * 4
    reserve = 2 * small_bytes + out_bytes + (2 << 20)

    # ---- spatial tile by BYTE budget (double-buffered input + f32 accumulator) ----
    bytes_per_lane = 2 * rows_in * itemsize + rows_acc * 4
    data_budget = max(usable - reserve, 128 * bytes_per_lane)
    t_hw = min(data_budget // bytes_per_lane,
               max(128, max_block_bytes // (rows_in * itemsize)))
    t_hw = max(128, (t_hw // 128) * 128)
    t_hw = int(min(t_hw, _round_up(HW, 128)))

    nsteps = int(pl.cdiv(HW, t_hw))
    ragged = (HW % t_hw) != 0

    blk_bytes = rows_in * itemsize * t_hw
    acc_bytes = rows_acc * 4 * t_hw
    vmem_need = 2 * blk_bytes + acc_bytes + 2 * small_bytes + out_bytes + (2 << 20)
    vmem_limit = int(min(cap - (8 << 20), max(vmem_need, 16 << 20)))

    flops = (1.0 * B * C * HW                 # streamed spatial reduction
             + 2.0 * B * C * DIM              # pool Linear
             + 2.0 * B * DIM * 3 * DIM        # in-proj
             + 4.0 * NHEAD * B * B * HEAD_DIM # attention matmuls
             + 2.0 * B * DIM * DIM            # out-proj
             + 4.0 * B * DIM * FF)            # feed-forward
    cost = pl.CostEstimate(
        flops=int(flops),
        transcendentals=int(NHEAD * B * B + 4 * B),
        bytes_accessed=int(B * C * HW * itemsize + small_bytes + out_bytes),
    )

    kernel = functools.partial(batchformer_kernel, hw=HW, t_hw=t_hw,
                               ragged=ragged, inv_hw=1.0 / float(HW))

    out3 = pl.pallas_call(
        kernel,
        out_shape=jax.ShapeDtypeStruct((2, B, DIM), jnp.float32),
        grid_spec=pltpu.PrefetchScalarGridSpec(
            num_scalar_prefetch=0,
            grid=(nsteps,),
            in_specs=[
                pl.BlockSpec((B, C, t_hw), lambda i: (0, 0, i)),
                pl.BlockSpec(wpool.shape, lambda i: (0, 0)),
                pl.BlockSpec(pack.shape, lambda i: (0, 0)),
            ],
            out_specs=pl.BlockSpec((2, B, DIM), lambda i: (0, 0, 0)),
            scratch_shapes=[pltpu.VMEM((B, C, t_hw), jnp.float32)],
        ),
        compiler_params=pltpu.CompilerParams(
            dimension_semantics=("arbitrary",),    # spatial reduction axis
            vmem_limit_bytes=vmem_limit,
        ),
        cost_estimate=cost,
    )(x3, wpool, pack)

    return out3.reshape(2 * B, DIM)


def make_params(key, C):
    """Deterministic parameter init. Weights stored as (in_features, out_features)."""
    ks = jax.random.split(key, 8)

    def w(k, shape, scale=0.1):
        return (scale * jax.random.normal(k, shape)).astype(jnp.float32)

    wpool = w(ks[0], (C, DIM))
    bpool = w(ks[1], (1, DIM))
    wqkv = w(ks[2], (DIM, 3 * DIM))
    bqkv = w(ks[3], (1, 3 * DIM))
    wout = w(ks[4], (DIM, DIM))
    bout = jnp.zeros((1, DIM), jnp.float32)
    g1 = jnp.ones((1, DIM), jnp.float32)
    be1 = jnp.zeros((1, DIM), jnp.float32)
    w1 = w(ks[5], (DIM, FF))
    bl1 = w(ks[6], (1, FF))
    w2 = w(ks[7], (FF, DIM))
    bl2 = jnp.zeros((1, DIM), jnp.float32)
    g2 = jnp.ones((1, DIM), jnp.float32)
    be2 = jnp.zeros((1, DIM), jnp.float32)
    return (wpool, bpool, wqkv, bqkv, wout, bout, g1, be1,
            w1, bl1, w2, bl2, g2, be2)


def reference_forward(x, params):
    """Pure-JAX reference mirroring the PyTorch math (dropout = identity)."""
    (wpool, bpool, wqkv, bqkv, wout, bout, g1, be1,
     w1, bl1, w2, bl2, g2, be2) = params
    pooled = x.astype(jnp.float32).mean(axis=(-2, -1))
    pre = pooled @ wpool + bpool
    feat = pre
    qkv = feat @ wqkv + bqkv
    q, k, v = qkv[:, :DIM], qkv[:, DIM:2 * DIM], qkv[:, 2 * DIM:]
    scale = 1.0 / jnp.sqrt(jnp.float32(HEAD_DIM))
    outs = []
    for h in range(NHEAD):
        sl = slice(h * HEAD_DIM, (h + 1) * HEAD_DIM)
        s = (q[:, sl] @ k[:, sl].T) * scale
        p = jax.nn.softmax(s, axis=-1)
        outs.append(p @ v[:, sl])
    attn = jnp.concatenate(outs, axis=-1) @ wout + bout
    src = _layernorm(feat + attn, g1, be1)
    ff = jnp.maximum(src @ w1 + bl1, 0.0) @ w2 + bl2
    src = _layernorm(src + ff, g2, be2)
    return jnp.concatenate([pre, src], axis=0)


if __name__ == "__main__":
    key = jax.random.PRNGKey(0)
    kx, kp = jax.random.split(key)

    # Case 1: HW divisible by 128 (single clean step).
    B, C, H, W = 2, 4, 16, 16
    x = jax.random.normal(kx, (B, C, H, W), dtype=jnp.float32)
    params = make_params(kp, C)

    out = jax.block_until_ready(batchformer_forward(x, params))
    ref = reference_forward(x, params)
    assert out.shape == (2 * B, DIM)
    assert jnp.allclose(out, ref, atol=1e-4, rtol=1e-4), float(jnp.max(jnp.abs(out - ref)))

    # Case 2: ragged HW (20*20 = 400) with a forced-small tile -> multi-step cdiv grid
    # exercising the masked last block and the accumulator init/finalize gating.
    x2 = jax.random.normal(jax.random.PRNGKey(1), (B, C, 20, 20), dtype=jnp.float32)
    out2 = jax.block_until_ready(batchformer_forward(x2, params, max_block_bytes=8192))
    ref2 = reference_forward(x2, params)
    assert out2.shape == (2 * B, DIM)
    assert jnp.allclose(out2, ref2, atol=1e-4, rtol=1e-4), float(jnp.max(jnp.abs(out2 - ref2)))

    print("KERNEL_OK")
</pallas_src>

<mosaic_0001>
module attributes {stable_mosaic.version = 11 : i64} {
  func.func @batchformer_kernel(%arg0: i32, %arg1: memref<2x4x256xf32, #tpu.memory_space<vmem>>, %arg2: memref<4x32xf32, #tpu.memory_space<vmem>>, %arg3: memref<144x128xf32, #tpu.memory_space<vmem>>, %arg4: memref<2x2x32xf32, #tpu.memory_space<vmem>>, %arg5: memref<2x4x256xf32, #tpu.memory_space<vmem>>) attributes {dimension_semantics = [#tpu.dimension_semantics<arbitrary>], iteration_bounds = array<i64: 1>, scalar_prefetch = 0 : i64, scratch_operands = 1 : i64, tpu.core_type = #tpu.core_type<tc>, window_params = [{transform_indices = @transform_0, window_bounds = array<i64: 2, 4, 256>}, {pipeline_mode = #tpu.pipeline_mode<synchronous>, transform_indices = @transform_1, window_bounds = array<i64: 4, 32>}, {pipeline_mode = #tpu.pipeline_mode<synchronous>, transform_indices = @transform_2, window_bounds = array<i64: 144, 128>}, {pipeline_mode = #tpu.pipeline_mode<synchronous>, transform_indices = @transform_3, window_bounds = array<i64: 2, 2, 32>}]} {
    %c0_i32 = arith.constant 0 : i32
    %0 = arith.cmpi eq, %arg0, %c0_i32 : i32
    %1 = arith.extui %0 : i1 to i32
    %c0_i32_0 = arith.constant 0 : i32
    %2 = arith.cmpi ne, %1, %c0_i32_0 : i32
    scf.if %2 {
      %cst = arith.constant 0.000000e+00 : f32
      %10 = vector.broadcast %cst : f32 to vector<2x4x256xf32>
      %c0_11 = arith.constant 0 : index
      %c0_12 = arith.constant 0 : index
      %c0_13 = arith.constant 0 : index
      %11 = vector.load %arg5[%c0_11, %c0_12, %c0_13] : memref<2x4x256xf32, #tpu.memory_space<vmem>>, vector<2x4x256xf32>
      tpu.vector_store %arg5[%c0_11, %c0_12, %c0_13], %10 {strides = array<i32>} : memref<2x4x256xf32, #tpu.memory_space<vmem>>, vector<2x4x256xf32>,
    } else {
    }
    %c0 = arith.constant 0 : index
    %c0_1 = arith.constant 0 : index
    %c0_2 = arith.constant 0 : index
    %3 = vector.load %arg1[%c0, %c0_1, %c0_2] : memref<2x4x256xf32, #tpu.memory_space<vmem>>, vector<2x4x256xf32>
    %c0_3 = arith.constant 0 : index
    %c0_4 = arith.constant 0 : index
    %c0_5 = arith.constant 0 : index
    %4 = vector.load %arg5[%c0_3, %c0_4, %c0_5] : memref<2x4x256xf32, #tpu.memory_space<vmem>>, vector<2x4x256xf32>
    %5 = arith.addf %4, %3 : vector<2x4x256xf32>
    %c0_6 = arith.constant 0 : index
    %c0_7 = arith.constant 0 : index
    %c0_8 = arith.constant 0 : index
    %6 = vector.load %arg5[%c0_6, %c0_7, %c0_8] : memref<2x4x256xf32, #tpu.memory_space<vmem>>, vector<2x4x256xf32>
    tpu.vector_store %arg5[%c0_6, %c0_7, %c0_8], %5 {strides = array<i32>} : memref<2x4x256xf32, #tpu.memory_space<vmem>>, vector<2x4x256xf32>,
    %c0_i32_9 = arith.constant 0 : i32
    %7 = arith.cmpi eq, %arg0, %c0_i32_9 : i32
    %8 = arith.extui %7 : i1 to i32
    %c0_i32_10 = arith.constant 0 : i32
    %9 = arith.cmpi ne, %8, %c0_i32_10 : i32
    scf.if %9 {
      %c0_11 = arith.constant 0 : index
      %c0_12 = arith.constant 0 : index
      %c0_13 = arith.constant 0 : index
      %10 = vector.load %arg5[%c0_11, %c0_12, %c0_13] : memref<2x4x256xf32, #tpu.memory_space<vmem>>, vector<2x4x256xf32>
      %cst = arith.constant dense<0.000000e+00> : vector<2x4xf32>
      %11 = vector.multi_reduction <add>, %10, %cst [2] : vector<2x4x256xf32> to vector<2x4xf32>
      %cst_14 = arith.constant 3.906250e-03 : f32
      %12 = vector.broadcast %cst_14 : f32 to vector<2x4xf32>
      %13 = arith.mulf %11, %12 : vector<2x4xf32>
      %c0_15 = arith.constant 0 : index
      %c0_16 = arith.constant 0 : index
      %14 = vector.load %arg2[%c0_15, %c0_16] : memref<4x32xf32, #tpu.memory_space<vmem>>, vector<4x32xf32>
      %cst_17 = arith.constant dense<0.000000e+00> : vector<2x32xf32>
      %15 = tpu.matmul %13, %14, %cst_17 {dimension_numbers = #tpu.dot_dimension_numbers<[1], [0], [0], [1], [0, 0, 1, 1], [], []>} : vector<2x4xf32>, vector<4x32xf32>, vector<2x32xf32> -> vector<2x32xf32>
      %c128 = arith.constant 128 : index
      %c0_18 = arith.constant 0 : index
      %16 = vector.load %arg3[%c128, %c0_18] : memref<144x128xf32, #tpu.memory_space<vmem>>, vector<1x32xf32>
      %17 = vector.broadcast %16 : vector<1x32xf32> to vector<2x32xf32>
      %18 = arith.addf %15, %17 : vector<2x32xf32>
      %c0_19 = arith.constant 0 : index
      %c0_20 = arith.constant 0 : index
      %19 = vector.load %arg3[%c0_19, %c0_20] : memref<144x128xf32, #tpu.memory_space<vmem>>, vector<32x96xf32>
      %c129 = arith.constant 129 : index
      %c0_21 = arith.constant 0 : index
      %20 = vector.load %arg3[%c129, %c0_21] : memref<144x128xf32, #tpu.memory_space<vmem>>, vector<1x96xf32>
      %cst_22 = arith.constant dense<0.000000e+00> : vector<2x96xf32>
      %21 = tpu.matmul %18, %19, %cst_22 {dimension_numbers = #tpu.dot_dimension_numbers<[1], [0], [0], [1], [0, 0, 1, 1], [], []>} : vector<2x32xf32>, vector<32x96xf32>, vector<2x96xf32> -> vector<2x96xf32>
      %22 = vector.broadcast %20 : vector<1x96xf32> to vector<2x96xf32>
      %23 = arith.addf %21, %22 : vector<2x96xf32>
      %24 = vector.extract_strided_slice %23 {offsets = [0, 0], sizes = [2, 8], strides = [1, 1]} : vector<2x96xf32> to vector<2x8xf32>
      %25 = vector.extract_strided_slice %23 {offsets = [0, 32], sizes = [2, 8], strides = [1, 1]} : vector<2x96xf32> to vector<2x8xf32>
      %26 = vector.extract_strided_slice %23 {offsets = [0, 64], sizes = [2, 8], strides = [1, 1]} : vector<2x96xf32> to vector<2x8xf32>
      %cst_23 = arith.constant dense<0.000000e+00> : vector<2x2xf32>
      %27 = tpu.matmul %24, %25, %cst_23 {dimension_numbers = #tpu.dot_dimension_numbers<[1], [1], [0], [0], [0, 0, 1, 0], [], []>} : vector<2x8xf32>, vector<2x8xf32>, vector<2x2xf32> -> vector<2x2xf32>
      %cst_24 = arith.constant 0.353553385 : f32
      %28 = vector.broadcast %cst_24 : f32 to vector<2x2xf32>
      %29 = arith.mulf %27, %28 : vector<2x2xf32>
      %cst_25 = arith.constant dense<0xFF800000> : vector<2xf32>
      %30 = vector.multi_reduction <maximumf>, %29, %cst_25 [1] : vector<2x2xf32> to vector<2xf32>
      %31 = vector.shape_cast %30 : vector<2xf32> to vector<2x1xf32>
      %32 = vector.broadcast %31 : vector<2x1xf32> to vector<2x2xf32>
      %33 = arith.subf %29, %32 : vector<2x2xf32>
      %34 = math.exp %33 : vector<2x2xf32>
      %cst_26 = arith.constant dense<0.000000e+00> : vector<2xf32>
      %35 = vector.multi_reduction <add>, %34, %cst_26 [1] : vector<2x2xf32> to vector<2xf32>
      %36 = vector.shape_cast %35 : vector<2xf32> to vector<2x1xf32>
      %37 = vector.broadcast %36 : vector<2x1xf32> to vector<2x2xf32>
      %38 = arith.divf %34, %37 : vector<2x2xf32>
      %cst_27 = arith.constant dense<0.000000e+00> : vector<2x8xf32>
      %39 = tpu.matmul %38, %26, %cst_27 {dimension_numbers = #tpu.dot_dimension_numbers<[1], [0], [0], [1], [0, 0, 1, 1], [], []>} : vector<2x2xf32>, vector<2x8xf32>, vector<2x8xf32> -> vector<2x8xf32>
      %40 = vector.extract_strided_slice %23 {offsets = [0, 8], sizes = [2, 8], strides = [1, 1]} : vector<2x96xf32> to vector<2x8xf32>
      %41 = vector.extract_strided_slice %23 {offsets = [0, 40], sizes = [2, 8], strides = [1, 1]} : vector<2x96xf32> to vector<2x8xf32>
      %42 = vector.extract_strided_slice %23 {offsets = [0, 72], sizes = [2, 8], strides = [1, 1]} : vector<2x96xf32> to vector<2x8xf32>
      %cst_28 = arith.constant dense<0.000000e+00> : vector<2x2xf32>
      %43 = tpu.matmul %40, %41, %cst_28 {dimension_numbers = #tpu.dot_dimension_numbers<[1], [1], [0], [0], [0, 0, 1, 0], [], []>} : vector<2x8xf32>, vector<2x8xf32>, vector<2x2xf32> -> vector<2x2xf32>
      %cst_29 = arith.constant 0.353553385 : f32
      %44 = vector.broadcast %cst_29 : f32 to vector<2x2xf32>
      %45 = arith.mulf %43, %44 : vector<2x2xf32>
      %cst_30 = arith.constant dense<0xFF800000> : vector<2xf32>
      %46 = vector.multi_reduction <maximumf>, %45, %cst_30 [1] : vector<2x2xf32> to vector<2xf32>
      %47 = vector.shape_cast %46 : vector<2xf32> to vector<2x1xf32>
      %48 = vector.broadcast %47 : vector<2x1xf32> to vector<2x2xf32>
      %49 = arith.subf %45, %48 : vector<2x2xf32>
      %50 = math.exp %49 : vector<2x2xf32>
      %cst_31 = arith.constant dense<0.000000e+00> : vector<2xf32>
      %51 = vector.multi_reduction <add>, %50, %cst_31 [1] : vector<2x2xf32> to vector<2xf32>
      %52 = vector.shape_cast %51 : vector<2xf32> to vector<2x1xf32>
      %53 = vector.broadcast %52 : vector<2x1xf32> to vector<2x2xf32>
      %54 = arith.divf %50, %53 : vector<2x2xf32>
      %cst_32 = arith.constant dense<0.000000e+00> : vector<2x8xf32>
      %55 = tpu.matmul %54, %42, %cst_32 {dimension_numbers = #tpu.dot_dimension_numbers<[1], [0], [0], [1], [0, 0, 1, 1], [], []>} : vector<2x2xf32>, vector<2x8xf32>, vector<2x8xf32> -> vector<2x8xf32>
      %56 = vector.extract_strided_slice %23 {offsets = [0, 16], sizes = [2, 8], strides = [1, 1]} : vector<2x96xf32> to vector<2x8xf32>
      %57 = vector.extract_strided_slice %23 {offsets = [0, 48], sizes = [2, 8], strides = [1, 1]} : vector<2x96xf32> to vector<2x8xf32>
      %58 = vector.extract_strided_slice %23 {offsets = [0, 80], sizes = [2, 8], strides = [1, 1]} : vector<2x96xf32> to vector<2x8xf32>
      %cst_33 = arith.constant dense<0.000000e+00> : vector<2x2xf32>
      %59 = tpu.matmul %56, %57, %cst_33 {dimension_numbers = #tpu.dot_dimension_numbers<[1], [1], [0], [0], [0, 0, 1, 0], [], []>} : vector<2x8xf32>, vector<2x8xf32>, vector<2x2xf32> -> vector<2x2xf32>
      %cst_34 = arith.constant 0.353553385 : f32
      %60 = vector.broadcast %cst_34 : f32 to vector<2x2xf32>
      %61 = arith.mulf %59, %60 : vector<2x2xf32>
      %cst_35 = arith.constant dense<0xFF800000> : vector<2xf32>
      %62 = vector.multi_reduction <maximumf>, %61, %cst_35 [1] : vector<2x2xf32> to vector<2xf32>
      %63 = vector.shape_cast %62 : vector<2xf32> to vector<2x1xf32>
      %64 = vector.broadcast %63 : vector<2x1xf32> to vector<2x2xf32>
      %65 = arith.subf %61, %64 : vector<2x2xf32>
      %66 = math.exp %65 : vector<2x2xf32>
      %cst_36 = arith.constant dense<0.000000e+00> : vector<2xf32>
      %67 = vector.multi_reduction <add>, %66, %cst_36 [1] : vector<2x2xf32> to vector<2xf32>
      %68 = vector.shape_cast %67 : vector<2xf32> to vector<2x1xf32>
      %69 = vector.broadcast %68 : vector<2x1xf32> to vector<2x2xf32>
      %70 = arith.divf %66, %69 : vector<2x2xf32>
      %cst_37 = arith.constant dense<0.000000e+00> : vector<2x8xf32>
      %71 = tpu.matmul %70, %58, %cst_37 {dimension_numbers = #tpu.dot_dimension_numbers<[1], [0], [0], [1], [0, 0, 1, 1], [], []>} : vector<2x2xf32>, vector<2x8xf32>, vector<2x8xf32> -> vector<2x8xf32>
      %72 = vector.extract_strided_slice %23 {offsets = [0, 24], sizes = [2, 8], strides = [1, 1]} : vector<2x96xf32> to vector<2x8xf32>
      %73 = vector.extract_strided_slice %23 {offsets = [0, 56], sizes = [2, 8], strides = [1, 1]} : vector<2x96xf32> to vector<2x8xf32>
      %74 = vector.extract_strided_slice %23 {offsets = [0, 88], sizes = [2, 8], strides = [1, 1]} : vector<2x96xf32> to vector<2x8xf32>
      %cst_38 = arith.constant dense<0.000000e+00> : vector<2x2xf32>
      %75 = tpu.matmul %72, %73, %cst_38 {dimension_numbers = #tpu.dot_dimension_numbers<[1], [1], [0], [0], [0, 0, 1, 0], [], []>} : vector<2x8xf32>, vector<2x8xf32>, vector<2x2xf32> -> vector<2x2xf32>
      %cst_39 = arith.constant 0.353553385 : f32
      %76 = vector.broadcast %cst_39 : f32 to vector<2x2xf32>
      %77 = arith.mulf %75, %76 : vector<2x2xf32>
      %cst_40 = arith.constant dense<0xFF800000> : vector<2xf32>
      %78 = vector.multi_reduction <maximumf>, %77, %cst_40 [1] : vector<2x2xf32> to vector<2xf32>
      %79 = vector.shape_cast %78 : vector<2xf32> to vector<2x1xf32>
      %80 = vector.broadcast %79 : vector<2x1xf32> to vector<2x2xf32>
      %81 = arith.subf %77, %80 : vector<2x2xf32>
      %82 = math.exp %81 : vector<2x2xf32>
      %cst_41 = arith.constant dense<0.000000e+00> : vector<2xf32>
      %83 = vector.multi_reduction <add>, %82, %cst_41 [1] : vector<2x2xf32> to vector<2xf32>
      %84 = vector.shape_cast %83 : vector<2xf32> to vector<2x1xf32>
      %85 = vector.broadcast %84 : vector<2x1xf32> to vector<2x2xf32>
      %86 = arith.divf %82, %85 : vector<2x2xf32>
      %cst_42 = arith.constant dense<0.000000e+00> : vector<2x8xf32>
      %87 = tpu.matmul %86, %74, %cst_42 {dimension_numbers = #tpu.dot_dimension_numbers<[1], [0], [0], [1], [0, 0, 1, 1], [], []>} : vector<2x2xf32>, vector<2x8xf32>, vector<2x8xf32> -> vector<2x8xf32>
      %c32 = arith.constant 32 : index
      %c0_43 = arith.constant 0 : index
      %88 = vector.load %arg3[%c32, %c0_43] : memref<144x128xf32, #tpu.memory_space<vmem>>, vector<32x32xf32>
      %89 = tpu.concatenate %39, %55, %71, %87 in 1 : vector<2x8xf32>, vector<2x8xf32>, vector<2x8xf32>, vector<2x8xf32> -> vector<2x32xf32>
      %cst_44 = arith.constant dense<0.000000e+00> : vector<2x32xf32>
      %90 = tpu.matmul %89, %88, %cst_44 {dimension_numbers = #tpu.dot_dimension_numbers<[1], [0], [0], [1], [0, 0, 1, 1], [], []>} : vector<2x32xf32>, vector<32x32xf32>, vector<2x32xf32> -> vector<2x32xf32>
      %c130 = arith.constant 130 : index
      %c0_45 = arith.constant 0 : index
      %91 = vector.load %arg3[%c130, %c0_45] : memref<144x128xf32, #tpu.memory_space<vmem>>, vector<1x32xf32>
      %92 = vector.broadcast %91 : vector<1x32xf32> to vector<2x32xf32>
      %93 = arith.addf %90, %92 : vector<2x32xf32>
      %94 = arith.addf %18, %93 : vector<2x32xf32>
      %c131 = arith.constant 131 : index
      %c0_46 = arith.constant 0 : index
      %95 = vector.load %arg3[%c131, %c0_46] : memref<144x128xf32, #tpu.memory_space<vmem>>, vector<1x32xf32>
      %c132 = arith.constant 132 : index
      %c0_47 = arith.constant 0 : index
      %96 = vector.load %arg3[%c132, %c0_47] : memref<144x128xf32, #tpu.memory_space<vmem>>, vector<1x32xf32>
      %cst_48 = arith.constant dense<0.000000e+00> : vector<2xf32>
      %97 = vector.multi_reduction <add>, %94, %cst_48 [1] : vector<2x32xf32> to vector<2xf32>
      %98 = vector.shape_cast %97 : vector<2xf32> to vector<2x1xf32>
      %cst_49 = arith.constant 3.200000e+01 : f32
      %99 = vector.broadcast %cst_49 : f32 to vector<2x1xf32>
      %100 = arith.divf %98, %99 : vector<2x1xf32>
      %101 = vector.broadcast %100 : vector<2x1xf32> to vector<2x32xf32>
      %102 = arith.subf %94, %101 : vector<2x32xf32>
      %103 = arith.mulf %102, %102 : vector<2x32xf32>
      %cst_50 = arith.constant dense<0.000000e+00> : vector<2xf32>
      %104 = vector.multi_reduction <add>, %103, %cst_50 [1] : vector<2x32xf32> to vector<2xf32>
      %105 = vector.shape_cast %104 : vector<2xf32> to vector<2x1xf32>
      %cst_51 = arith.constant 3.200000e+01 : f32
      %106 = vector.broadcast %cst_51 : f32 to vector<2x1xf32>
      %107 = arith.divf %105, %106 : vector<2x1xf32>
      %108 = vector.broadcast %100 : vector<2x1xf32> to vector<2x32xf32>
      %109 = arith.subf %94, %108 : vector<2x32xf32>
      %cst_52 = arith.constant 9.99999974E-6 : f32
      %110 = vector.broadcast %cst_52 : f32 to vector<2x1xf32>
      %111 = arith.addf %107, %110 : vector<2x1xf32>
      %112 = math.rsqrt %111 : vector<2x1xf32>
      %113 = vector.broadcast %112 : vector<2x1xf32> to vector<2x32xf32>
      %114 = arith.mulf %109, %113 : vector<2x32xf32>
      %115 = vector.broadcast %95 : vector<1x32xf32> to vector<2x32xf32>
      %116 = arith.mulf %114, %115 : vector<2x32xf32>
      %117 = vector.broadcast %96 : vector<1x32xf32> to vector<2x32xf32>
      %118 = arith.addf %116, %117 : vector<2x32xf32>
      %c64 = arith.constant 64 : index
      %c0_53 = arith.constant 0 : index
      %119 = vector.load %arg3[%c64, %c0_53] : memref<144x128xf32, #tpu.memory_space<vmem>>, vector<32x32xf32>
      %c96 = arith.constant 96 : index
      %c0_54 = arith.constant 0 : index
      %120 = vector.load %arg3[%c96, %c0_54] : memref<144x128xf32, #tpu.memory_space<vmem>>, vector<32x32xf32>
      %cst_55 = arith.constant dense<0.000000e+00> : vector<2x32xf32>
      %121 = tpu.matmul %118, %119, %cst_55 {dimension_numbers = #tpu.dot_dimension_numbers<[1], [0], [0], [1], [0, 0, 1, 1], [], []>} : vector<2x32xf32>, vector<32x32xf32>, vector<2x32xf32> -> vector<2x32xf32>
      %c133 = arith.constant 133 : index
      %c0_56 = arith.constant 0 : index
      %122 = vector.load %arg3[%c133, %c0_56] : memref<144x128xf32, #tpu.memory_space<vmem>>, vector<1x32xf32>
      %123 = vector.broadcast %122 : vector<1x32xf32> to vector<2x32xf32>
      %124 = arith.addf %121, %123 : vector<2x32xf32>
      %cst_57 = arith.constant 0.000000e+00 : f32
      %125 = vector.broadcast %cst_57 : f32 to vector<2x32xf32>
      %126 = arith.maximumf %124, %125 : vector<2x32xf32>
      %cst_58 = arith.constant dense<0.000000e+00> : vector<2x32xf32>
      %127 = tpu.matmul %126, %120, %cst_58 {dimension_numbers = #tpu.dot_dimension_numbers<[1], [0], [0], [1], [0, 0, 1, 1], [], []>} : vector<2x32xf32>, vector<32x32xf32>, vector<2x32xf32> -> vector<2x32xf32>
      %c134 = arith.constant 134 : index
      %c0_59 = arith.constant 0 : index
      %128 = vector.load %arg3[%c134, %c0_59] : memref<144x128xf32, #tpu.memory_space<vmem>>, vector<1x32xf32>
      %129 = vector.broadcast %128 : vector<1x32xf32> to vector<2x32xf32>
      %130 = arith.addf %127, %129 : vector<2x32xf32>
      %131 = arith.addf %118, %130 : vector<2x32xf32>
      %c135 = arith.constant 135 : index
      %c0_60 = arith.constant 0 : index
      %132 = vector.load %arg3[%c135, %c0_60] : memref<144x128xf32, #tpu.memory_space<vmem>>, vector<1x32xf32>
      %c136 = arith.constant 136 : index
      %c0_61 = arith.constant 0 : index
      %133 = vector.load %arg3[%c136, %c0_61] : memref<144x128xf32, #tpu.memory_space<vmem>>, vector<1x32xf32>
      %cst_62 = arith.constant dense<0.000000e+00> : vector<2xf32>
      %134 = vector.multi_reduction <add>, %131, %cst_62 [1] : vector<2x32xf32> to vector<2xf32>
      %135 = vector.shape_cast %134 : vector<2xf32> to vector<2x1xf32>
      %cst_63 = arith.constant 3.200000e+01 : f32
      %136 = vector.broadcast %cst_63 : f32 to vector<2x1xf32>
      %137 = arith.divf %135, %136 : vector<2x1xf32>
      %138 = vector.broadcast %137 : vector<2x1xf32> to vector<2x32xf32>
      %139 = arith.subf %131, %138 : vector<2x32xf32>
      %140 = arith.mulf %139, %139 : vector<2x32xf32>
      %cst_64 = arith.constant dense<0.000000e+00> : vector<2xf32>
      %141 = vector.multi_reduction <add>, %140, %cst_64 [1] : vector<2x32xf32> to vector<2xf32>
      %142 = vector.shape_cast %141 : vector<2xf32> to vector<2x1xf32>
      %cst_65 = arith.constant 3.200000e+01 : f32
      %143 = vector.broadcast %cst_65 : f32 to vector<2x1xf32>
      %144 = arith.divf %142, %143 : vector<2x1xf32>
      %145 = vector.broadcast %137 : vector<2x1xf32> to vector<2x32xf32>
      %146 = arith.subf %131, %145 : vector<2x32xf32>
      %cst_66 = arith.constant 9.99999974E-6 : f32
      %147 = vector.broadcast %cst_66 : f32 to vector<2x1xf32>
      %148 = arith.addf %144, %147 : vector<2x1xf32>
      %149 = math.rsqrt %148 : vector<2x1xf32>
      %150 = vector.broadcast %149 : vector<2x1xf32> to vector<2x32xf32>
      %151 = arith.mulf %146, %150 : vector<2x32xf32>
      %152 = vector.broadcast %132 : vector<1x32xf32> to vector<2x32xf32>
      %153 = arith.mulf %151, %152 : vector<2x32xf32>
      %154 = vector.broadcast %133 : vector<1x32xf32> to vector<2x32xf32>
      %155 = arith.addf %153, %154 : vector<2x32xf32>
      %156 = vector.shape_cast %18 : vector<2x32xf32> to vector<1x2x32xf32>
      %157 = vector.shape_cast %155 : vector<2x32xf32> to vector<1x2x32xf32>
      %158 = tpu.concatenate %156, %157 in 0 : vector<1x2x32xf32>, vector<1x2x32xf32> -> vector<2x2x32xf32>
      %c0_67 = arith.constant 0 : index
      %c0_68 = arith.constant 0 : index
      %c0_69 = arith.constant 0 : index
      %159 = vector.load %arg4[%c0_67, %c0_68, %c0_69] : memref<2x2x32xf32, #tpu.memory_space<vmem>>, vector<2x2x32xf32>
      tpu.vector_store %arg4[%c0_67, %c0_68, %c0_69], %158 {strides = array<i32>} : memref<2x2x32xf32, #tpu.memory_space<vmem>>, vector<2x2x32xf32>,
    } else {
    }
    return
  }
  func.func @transform_0(%arg0: i32) -> (i32, i32, i32) {
    %c0_i32 = arith.constant 0 : i32
    %c0_i32_0 = arith.constant 0 : i32
    %c0_i32_1 = arith.constant 0 : i32
    return %c0_i32, %c0_i32_0, %arg0 : i32, i32, i32
  }
  func.func @transform_1(%arg0: i32) -> (i32, i32) {
    %c0_i32 = arith.constant 0 : i32
    %c0_i32_0 = arith.constant 0 : i32
    %c0_i32_1 = arith.constant 0 : i32
    return %c0_i32, %c0_i32_0 : i32, i32
  }
  func.func @transform_2(%arg0: i32) -> (i32, i32) {
    %c0_i32 = arith.constant 0 : i32
    %c0_i32_0 = arith.constant 0 : i32
    %c0_i32_1 = arith.constant 0 : i32
    return %c0_i32, %c0_i32_0 : i32, i32
  }
  func.func @transform_3(%arg0: i32) -> (i32, i32, i32) {
    %c0_i32 = arith.constant 0 : i32
    %c0_i32_0 = arith.constant 0 : i32
    %c0_i32_1 = arith.constant 0 : i32
    %c0_i32_2 = arith.constant 0 : i32
    return %c0_i32, %c0_i32_0, %c0_i32_1 : i32, i32, i32
  }
}

</mosaic_0001>

<bundles_post_ra>
// kernel: tpu_custom_call.1
= control target key start
LH: loop header
LB: loop body
LE: loop exit
PB: predicated region body
PF: predicated region fallthrough
CT: control target
= control target key end

     0   :  { %8 = vsyncpa [#allocation4], 0  ;;  %s1809_s0 = inlined_call_operand.hbm [shape: f32[2,4,256], index: 0, kind: input, shape index: {}]   ;;  %s1810_s1 = inlined_call_operand.hbm [shape: f32[4,32], index: 1, kind: input, shape index: {}]   ;;  %s1811_s2 = inlined_call_operand.hbm [shape: f32[144,128], index: 2, kind: input, shape index: {}]   ;;  %s1812_s3 = inlined_call_operand.hbm [shape: f32[2,2,32], index: 3, kind: output, shape index: {}]  }
   0x1   :  { %9 = vsyncpa [#allocation7], 0 }
   0x2   :  { %10 = vsyncpa [#allocation5], 0  ;;  %s1602_s12 = smov [#allocation6]   ;;  %s1603_s14 = smov [#allocation3]  }
   0x3   :  { %s29_s13 = sshll.u32 %s1602_s12, 4  ;;  %s16_s15 = sshll.u32 %s1603_s14, 4  ;;  %s30_s13 = int_to_ptr.vmem [resolvable:$true] %s29_s13  ;;  %s1646_s15 = int_to_ptr.vmem [resolvable:$true] %s16_s15 }
   0x4   :  { %s1508_s18 = scalar_lea.hbm %s1810_s1, 64 }
   0x5   :  { %p1509_p0 = scmp.ne.s32.totalorder %s1810_s1, %s1508_s18  ;;  %p1512_p1 = scmp.lt.u32.totalorder %s1508_s18, %s1810_s1 }
   0x7   :  { %p1514_p2 = pnand %p1512_p1, %p1509_p0 }
   0x9   :  { %1517 = shalt.err (!%p1514_p2)
}
   0xa   :  { %s1518_s23 = scalar_lea.vmem %s30_s13, 64  ;;  %p1523_p4 = scmp.lt.s32.totalorder %s30_s13, %s30_s13 }
   0xb   :  { %p1519_p3 = scmp.ne.s32.totalorder %s30_s13, %s1518_s23  ;;  %p1524_p5 = scmp.lt.s32.totalorder %s1518_s23, %s1518_s23 }
   0xd   :  { %p1525_p6 = por %p1524_p5, %p1523_p4 }
   0xf   :  { %p1526_p7 = pnand %p1525_p6, %p1519_p3 }
  0x11   :  { %1529 = shalt.err (!%p1526_p7)
}
  0x12   :  { %32 = dma.hbm_to_vmem [thread:$0]  %s1810_s1, 64, %s30_s13, [#allocation7]  }
  0x13   :  { %s1530_s28 = scalar_lea.hbm %s1809_s0, 256 }
  0x14   :  { %p1531_p8 = scmp.ne.s32.totalorder %s1809_s0, %s1530_s28  ;;  %p1534_p9 = scmp.lt.u32.totalorder %s1530_s28, %s1809_s0 }
  0x16   :  { %p1536_p10 = pnand %p1534_p9, %p1531_p8 }
  0x18   :  { %1539 = shalt.err (!%p1536_p10)
}
  0x19   :  { %s1540_s6 = scalar_lea.vmem %s1646_s15, 256  ;;  %p1545_p12 = scmp.lt.s32.totalorder %s1646_s15, %s1646_s15 }
  0x1a   :  { %p1541_p11 = scmp.ne.s32.totalorder %s1646_s15, %s1540_s6  ;;  %p1546_p13 = scmp.lt.s32.totalorder %s1540_s6, %s1540_s6 }
  0x1c   :  { %p1547_p0 = por %p1546_p13, %p1545_p12 }
  0x1e   :  { %p1548_p1 = pnand %p1547_p0, %p1541_p11 }
  0x20   :  { %1551 = shalt.err (!%p1548_p1)
}
  0x21   :  { %s1604_s1 = smov 128   ;;  %s1605_s7 = smov 8  }
  0x22   :  { %22 = dma.hbm_to_vmem [thread:$0]  %s1809_s0, 256, %s1646_s15, [#allocation4], %s1604_s1, %s1604_s1, %s1605_s7  }
  0x23   :  { %s1606_s10 = smov [#allocation8]   ;;  %s1552_s14 = scalar_lea.hbm %s1811_s2, 2304 }
  0x24   :  { %s38_s11 = sshll.u32 %s1606_s10, 4  ;;  %p1553_p2 = scmp.ne.s32.totalorder %s1811_s2, %s1552_s14  ;;  %s39_s11 = int_to_ptr.vmem [resolvable:$true] %s38_s11 }
  0x25   :  { %p1556_p3 = scmp.lt.u32.totalorder %s1552_s14, %s1811_s2 }
  0x27   :  { %p1558_p4 = pnand %p1556_p3, %p1553_p2 }
  0x29   :  { %1561 = shalt.err (!%p1558_p4)
}
  0x2a   :  { %s1562_s20 = scalar_lea.vmem %s39_s11, 2304  ;;  %p1567_p6 = scmp.lt.s32.totalorder %s39_s11, %s39_s11 }
  0x2b   :  { %p1563_p5 = scmp.ne.s32.totalorder %s39_s11, %s1562_s20  ;;  %p1568_p7 = scmp.lt.s32.totalorder %s1562_s20, %s1562_s20 }
  0x2d   :  { %p1569_p8 = por %p1568_p7, %p1567_p6 }
  0x2f   :  { %p1570_p9 = pnand %p1569_p8, %p1563_p5 }
  0x31   :  { %1573 = shalt.err (!%p1570_p9)
}
  0x32   :  { %44 = dma.hbm_to_vmem [thread:$0]  %s1811_s2, 2304, %s39_s11, [#allocation7], %s1604_s1, %s1604_s1, %s1605_s7  }
  0x33   :  { %1596 = dma.done.wait [#allocation4], 256  }
  0x34   :  { %1597 = vsyncadd [#allocation4], 4294967040 }
  0x35   :  { %1598 = dma.done.wait [#allocation7], 2368  }
  0x36   :  { %1599 = vsyncadd [#allocation7], 4294964928  ;;  %vm79_vm0 = vcmask 1043456   ;;  %v60_v0 = vld [vmem:[#allocation3] sm:$0xff]  ;;  %v61_v1 = vld [vmem:[#allocation3 + $0x8] sm:$0xff]  ;;  %v1607_v11 = vmov 0.0   ;;  %v100_v16 = vlaneseq }
  0x37   :  { %v75_v2 = vcombine.high %v60_v0, %v60_v0  ;;  %v80_v3 = vsel %vm79_vm0, %v60_v0, 0.0  ;;  %v76_v4 = vcombine.high %v61_v1, %v61_v1  ;;  %v85_v6 = vsel %vm79_vm0, %v61_v1, 0.0  ;;  %v92_v10 = vld [vmem:[#allocation6] sm:$0xf]  ;;  %1349 = vmatprep.subr.mxu0 %v1607_v11  ;;  %v188_v12 = vld [vmem:[#allocation8] sm:$0xff]  ;;  %v189_v13 = vld [vmem:[#allocation8 + $0x8] sm:$0xff] }
  0x38   :  { %vm1608_vm1 = vmmov 0   ;;  %1350 = vmatpush3.msk.msra.mxu0 %vm79_vm0, %v92_v10  ;;  %v1609_v14 = vmov 0.0|0.0   ;;  %v1439_v15 = vpack.c.bf16 %v189_v13, %v188_v12  ;;  %v101_v17 = vand.u32 127, %v100_v16  ;;  %v190_v27 = vld [vmem:[#allocation8 + $0x10] sm:$0xff]  ;;  %v191_v28 = vld [vmem:[#allocation8 + $0x18] sm:$0xff]  ;;  %s1610_s2 = smov 64  }
  0x39   :  { %v81_v5 = vsel %vm79_vm0, %v75_v2, 0.0  ;;  %v86_v7 = vsel %vm79_vm0, %v76_v4, 0.0  ;;  %1351 = vmatprep.mubr.msk.f32.mxu0 %vm1608_vm1, %v1607_v11  ;;  %1362 = vmatprep.mubr.msk.f32.mxu1 %vm1608_vm1, %v1607_v11  ;;  %v103_v18 = vshrl.u32 %v100_v16, 7  ;;  %vm110_vm2 = vcmask 1041409   ;;  %v1280_v30 = vld [vmem:[#allocation8 + $0x80] ss:$0 sm:$0xff] }
  0x3a   :  { %v82_v8 = vadd.f32 %v81_v5, %v80_v3  ;;  %v87_v9 = vadd.f32 %v86_v7, %v85_v6  ;;  %1365 = vmatprep.subr.mxu0 %v1607_v11  ;;  %1438 = vmatprep.subr.bf16.mxu1 %v1609_v14  ;;  %vm112_vm3 = vcmask 31744   ;;  %v1442_v29 = vpack.c.bf16 %v191_v28, %v190_v27  ;;  %v1283_v34 = vld [vmem:[#allocation8 + $0x81] ss:$0 sm:$0xff]  ;;  %s1611_s21 = smov 96   ;;  %s1612_s22 = smov 88  }
  0x3b   :  { %1440 = vmatpush3.bf16.msra.mxu1 %v1439_v15  ;;  %v104_v20 = vsub.s32 %v101_v17, %v103_v18  ;;  %vm1044_vm4 = vcmask 254976   ;;  %vm197_vm5 = vcmask 261120   ;;  %s1613_s23 = smov 120   ;;  %vm274_vm6 = vcmask 64512   ;;  %s1614_s24 = smov 80  }
  0x3c   :  { %83 = vadd.xlane.f32.xlu0 %v82_v8  ;;  %1441 = vmatprep.subr.bf16.mxu1 %v1609_v14  ;;  %vm368_vm7 = vcmask 1041408   ;;  %vm350_vm8 = vcmask 9216   ;;  %s1615_s25 = smov 112   ;;  %s1616_s26 = smov 72   ;;  %vm364_vm9 = vcmask 15360   ;;  %vm959_vm10 = vcmask 130048  }
  0x3d   :  { %s1617_s27 = smov 104   ;;  %s1618_s28 = smov 48   ;;  %vm961_vm11 = vcmask 195584  }
  0x3e   :  { %s1619_s29 = smov 56   ;;  %s1620_s30 = smov 40  }
  0x3f   :  { %1443 = vmatpush3.bf16.msra.mxu1 %v1442_v29  ;;  %s1621_s4 = smov 16   ;;  %s1622_s5 = smov 24  }
  0x40   :  { %88 = vadd.xlane.f32.xlu0 %v87_v9  ;;  %1385 = vmatprep.subr.mxu1 %v1607_v11  ;;  %s1623_s6 = smov [#allocation9]  }
  0x41   :  { %s1267_s1 = sshll.u32 %s1623_s6, 4  ;;  %s1268_s1 = int_to_ptr.vmem [resolvable:$true] %s1267_s1 }
  0x42   :  { %p1579_p11 = scmp.lt.s32.totalorder %s1268_s1, %s1268_s1 }
  0xc9   :  { %v84_v19 = vpop.xlane.xlu0 %83 }
  0xca   :  { %v90_v21 = vmul.f32 0.00390625, %v84_v19 }
  0xcc   :  { %v105_v24 = vrot.slane %v90_v21, %v104_v20 }
  0xcd   :  { %v89_v22 = vpop.xlane.xlu0 %88 }
  0xce   :  { %v91_v23 = vmul.f32 0.00390625, %v89_v22 }
  0xd0   :  { %v109_v25 = vrot.slane %v91_v23, %v104_v20 }
  0xd2   :  { %v111_v26 = vsel %vm110_vm2, %v109_v25, %v105_v24 }
  0xd3   :  { %1352 = vmatmul.mubr.msk.f32.vlgmr.msra.gmra.mrb[0].mxu0 %vm112_vm3, %v111_v26 }
  0xd4   :  { %1367 = vmatprep.mubr.msk.f32.mxu0 %vm1608_vm1, %v1607_v11 }
 0x1a6   :  { %v184_v31 = vpop.f32.mrb[0].mxu0 }
 0x1a7   :  { %v1707_v32 = vadd.f32 %v1280_v30, %v184_v31  ;;  %v1353_v33 = vpop.f32.mrb[1].mxu0 }
 0x1a9   :  { %1260 = vst.msk [vmem:[#allocation9] sm:$0x3] %vm1044_vm4, %v1707_v32  ;;  %1363 = vmatmul.mubr.msk.f32.vlgmr.msra.gmra.mrb[0].mxu1 %vm197_vm5, %v1707_v32 }
 0x1aa   :  { %1387 = vmatprep.mubr.msk.f32.mxu1 %vm1608_vm1, %v1607_v11 }
 0x27c   :  { %v267_v35 = vpop.f32.mrb[0].mxu1 }
 0x27d   :  { %v1715_v36 = vadd.f32 %v1283_v34, %v267_v35  ;;  %v1364_v37 = vpop.f32.mrb[1].mxu1 }
 0x27f   :  { %362 = vrot.lane.b32.xlu0 %v1715_v36, %s1610_s2  ;;  %272 = vrot.lane.b32.xlu1 %v1715_v36, %s1611_s21 }
 0x283   :  { %443 = vrot.lane.b32.xlu0 %v1715_v36, %s1612_s22 }
 0x287   :  { %441 = vrot.lane.b32.xlu0 %v1715_v36, %s1613_s23 }
 0x2f1   :  { %v273_v38 = vpop.permute.xlu1 %272  ;;  %v363_v39 = vpop.permute.xlu0 %362 }
 0x2f2   :  { %1366 = vmatpush3.xpose.msk.msra.mxu0 %vm274_vm6, %v273_v38  ;;  %v942_v38 = vld [vmem:[#allocation8 + $0x20] sm:$0xff] }
 0x2f3   :  { %1370 = vmatprep.subr.mxu0 %v1607_v11 }
 0x2f5   :  { %1368 = vmatmul.mubr.msk.f32.vlgmr.msra.gmra.mrb[2].mxu0 %vm274_vm6, %v1715_v36  ;;  %v444_v50 = vpop.permute.xlu0 %443 }
 0x2f6   :  { %1371 = vmatpush3.msk.msra.mxu0 %vm368_vm7, %v363_v39  ;;  %1372 = vmatprep.mubr.msk.f32.mxu0 %vm1608_vm1, %v1607_v11  ;;  %v943_v39 = vld [vmem:[#allocation8 + $0x28] sm:$0xff] }
 0x2f7   :  { %1375 = vmatprep.subr.mxu0 %v1607_v11 }
 0x2f9   :  { %v442_v51 = vpop.permute.xlu0 %441 }
 0x3c8   :  { %v345_v40 = vpop.f32.mrb[2].mxu0 }
 0x3c9   :  { %v349_v41 = vmul.f32 0.35355338, %v345_v40  ;;  %v1369_v42 = vpop.f32.mrb[3].mxu0  ;;  %v1445_v40 = vpack.c.bf16 %v943_v39, %v942_v38 }
 0x3ca   :  { %v945_v42 = vld [vmem:[#allocation8 + $0x38] sm:$0xff] }
 0x3cb   :  { %v351_v43 = vsel %vm350_vm8, %v349_v41, -inf }
 0x3cc   :  { %352 = vmax.xlane.f32.xlu1 %v351_v43 }
 0x3dd   :  { %610 = vrot.lane.b32.xlu1 %v1715_v36, %s1614_s24 }
 0x459   :  { %v353_v44 = vpop.xlane.xlu1 %352 }
 0x45a   :  { %v354_v45 = vsub.f32 %v349_v41, %v353_v44  ;;  %v944_v41 = vld [vmem:[#allocation8 + $0x30] sm:$0xff] }
 0x45b   :  { %v1448_v43 = vpack.c.bf16 %v945_v42, %v944_v41 }
 0x45c   :  { %v355_v46 = vmul.f32 1.442695, %v354_v45 }
 0x45d   :  { %v611_v47 = vpop.permute.xlu1 %610 }
 0x45e   :  { %1488 = vpow2.f32 %v355_v46  ;;  %1386 = vmatpush3.xpose.msk.msra.mxu1 %vm274_vm6, %v611_v47 }
 0x45f   :  { %1395 = vmatprep.subr.mxu1 %v1607_v11 }
 0x468   :  { %v1489_v48 = vpop.eup %1488 }
 0x469   :  { %v357_v49 = vsel %vm350_vm8, %v1489_v48, 0.0 }
 0x46a   :  { %358 = vadd.xlane.f32.xlu0 %v357_v49 }
 0x480   :  { %608 = vrot.lane.b32.xlu0 %v1715_v36, %s1615_s25 }
 0x484   :  { %777 = vrot.lane.b32.xlu0 %v1715_v36, %s1616_s26 }
 0x488   :  { %775 = vrot.lane.b32.xlu0 %v1715_v36, %s1617_s27 }
 0x4f7   :  { %v359_v52 = vpop.xlane.xlu0 %358 }
 0x4f8   :  { %1490 = vrcp.f32 %v359_v52 }
 0x4fb   :  { %v609_v53 = vpop.permute.xlu0 %608 }
 0x4fc   :  { %1388 = vmatmul.mubr.msk.f32.vlgmr.msra.gmra.mrb[2].mxu1 %vm274_vm6, %v609_v53 }
 0x4fd   :  { %1397 = vmatprep.mubr.msk.f32.mxu1 %vm1608_vm1, %v1607_v11 }
 0x4ff   :  { %v778_v54 = vpop.permute.xlu0 %777 }
 0x500   :  { %1396 = vmatpush3.xpose.msk.msra.mxu1 %vm274_vm6, %v778_v54 }
 0x501   :  { %1444 = vmatprep.subr.bf16.mxu1 %v1609_v14 }
 0x502   :  { %v1491_v55 = vpop.eup %1490 }
 0x503   :  { %v361_v56 = vmul.f32 %v1491_v55, %v1489_v48  ;;  %v776_v57 = vpop.permute.xlu0 %775 }
 0x504   :  { %1398 = vmatmul.mubr.msk.f32.vlgmr.msra.gmra.mrb[4].mxu1 %vm274_vm6, %v776_v57 }
 0x505   :  { %1373 = vmatmul.mubr.msk.f32.vlgmr.msra.gmra.mrb[4].mxu0 %vm364_vm9, %v361_v56  ;;  %1413 = vmatprep.mubr.msk.f32.mxu1 %vm1608_vm1, %v1607_v11  ;;  %v1301_v56 = vld [vmem:[#allocation8 + $0x82] ss:$0 sm:$0xff] }
 0x506   :  { %1376 = vmatpush3.xpose.msk.msra.mxu0 %vm274_vm6, %v444_v50  ;;  %1377 = vmatprep.mubr.msk.f32.mxu0 %vm1608_vm1, %v1607_v11 }
 0x507   :  { %1380 = vmatprep.subr.mxu0 %v1607_v11  ;;  %1446 = vmatpush3.bf16.msra.mxu1 %v1445_v40 }
 0x508   :  { %1447 = vmatprep.subr.bf16.mxu1 %v1609_v14 }
 0x509   :  { %1378 = vmatmul.mubr.msk.f32.vlgmr.msra.gmra.mrb[6].mxu0 %vm274_vm6, %v442_v51 }
 0x50a   :  { %1382 = vmatprep.mubr.msk.f32.mxu0 %vm1608_vm1, %v1607_v11 }
 0x50b   :  { %1449 = vmatpush3.bf16.msra.mxu1 %v1448_v43 }
 0x50c   :  { %1456 = vmatprep.subr.bf16.mxu1 %v1609_v14 }
 0x5cf   :  { %v682_v58 = vpop.f32.mrb[2].mxu1 }
 0x5d0   :  { %v686_v59 = vmul.f32 0.35355338, %v682_v58  ;;  %v1389_v60 = vpop.f32.mrb[3].mxu1 }
 0x5d2   :  { %v687_v61 = vsel %vm350_vm8, %v686_v59, -inf }
 0x5d3   :  { %688 = vmax.xlane.f32.xlu1 %v687_v61 }
 0x5d7   :  { %v849_v62 = vpop.f32.mrb[4].mxu1 }
 0x5d8   :  { %v1754_v63 = vpop.f32.mrb[4].mxu0  ;;  %v1399_v0 = vpop.f32.mrb[5].mxu1  ;;  %v853_v5 = vmul.f32 0.35355338, %v849_v62 }
 0x5d9   :  { %v1374_v1 = vpop.f32.mrb[5].mxu0 }
 0x5da   :  { %v854_v7 = vsel %vm350_vm8, %v853_v5, -inf }
 0x5dc   :  { %v515_v2 = vpop.f32.mrb[6].mxu0 }
 0x5dd   :  { %v519_v3 = vmul.f32 0.35355338, %v515_v2  ;;  %v1379_v4 = vpop.f32.mrb[7].mxu0 }
 0x5de   :  { %v1070_v4 = vld [vmem:[#allocation8 + $0x48] sm:$0xff] }
 0x5df   :  { %v520_v6 = vsel %vm350_vm8, %v519_v3, -inf }
 0x5e0   :  { %521 = vmax.xlane.f32.xlu0 %v520_v6  ;;  %v1072_v6 = vld [vmem:[#allocation8 + $0x58] sm:$0xff] }
 0x5e4   :  { %855 = vmax.xlane.f32.xlu0 %v854_v7 }
 0x660   :  { %v689_v8 = vpop.xlane.xlu1 %688 }
 0x661   :  { %v690_v9 = vsub.f32 %v686_v59, %v689_v8  ;;  %v1074_v8 = vld [vmem:[#allocation8 + $0x68] sm:$0xff] }
 0x663   :  { %v691_v10 = vmul.f32 1.442695, %v690_v9 }
 0x665   :  { %1492 = vpow2.f32 %v691_v10 }
 0x66d   :  { %v522_v12 = vpop.xlane.xlu0 %521 }
 0x66e   :  { %v523_v13 = vsub.f32 %v519_v3, %v522_v12  ;;  %v1069_v3 = vld [vmem:[#allocation8 + $0x40] sm:$0xff] }
 0x66f   :  { %v1493_v15 = vpop.eup %1492 }
 0x670   :  { %v524_v16 = vmul.f32 1.442695, %v523_v13  ;;  %v693_v17 = vsel %vm350_vm8, %v1493_v15, 0.0 }
 0x671   :  { %694 = vadd.xlane.f32.xlu0 %v693_v17  ;;  %v856_v18 = vpop.xlane.xlu0 %855 }
 0x672   :  { %1494 = vpow2.f32 %v524_v16  ;;  %v857_v19 = vsub.f32 %v853_v5, %v856_v18  ;;  %v1451_v5 = vpack.c.bf16 %v1070_v4, %v1069_v3  ;;  %v1303_v16 = vld [vmem:[#allocation8 + $0x83] ss:$0 sm:$0xff]  ;;  %v1304_v18 = vld [vmem:[#allocation8 + $0x84] ss:$0 sm:$0xff] }
 0x674   :  { %v858_v20 = vmul.f32 1.442695, %v857_v19 }
 0x676   :  { %1496 = vpow2.f32 %v858_v20 }
 0x67c   :  { %v1495_v21 = vpop.eup %1494 }
 0x67d   :  { %v526_v22 = vsel %vm350_vm8, %v1495_v21, 0.0 }
 0x67e   :  { %527 = vadd.xlane.f32.xlu0 %v526_v22  ;;  %v1076_v22 = vld [vmem:[#allocation8 + $0x78] sm:$0xff] }
 0x680   :  { %v1497_v23 = vpop.eup %1496 }
 0x681   :  { %v860_v24 = vsel %vm350_vm8, %v1497_v23, 0.0 }
 0x682   :  { %861 = vadd.xlane.f32.xlu1 %v860_v24  ;;  %v1305_v24 = vld [vmem:[#allocation8 + $0x85] ss:$0 sm:$0xff] }
 0x693   :  { %698 = vrot.lane.b32.xlu1 %v1715_v36, %s1618_s28 }
 0x694   :  { %531 = vrot.lane.b32.xlu0 %v1715_v36, %s1619_s29 }
 0x697   :  { %865 = vrot.lane.b32.xlu1 %v1715_v36, %s1620_s30 }
 0x6fe   :  { %v695_v25 = vpop.xlane.xlu0 %694 }
 0x70b   :  { %v528_v26 = vpop.xlane.xlu0 %527 }
 0x70c   :  { %1498 = vrcp.f32 %v528_v26 }
 0x70d   :  { %1500 = vrcp.f32 %v695_v25 }
 0x70f   :  { %v862_v27 = vpop.xlane.xlu1 %861  ;;  %v532_v28 = vpop.permute.xlu0 %531 }
 0x710   :  { %1381 = vmatpush3.msk.msra.mxu0 %vm368_vm7, %v532_v28  ;;  %1502 = vrcp.f32 %v862_v27  ;;  %v1307_v28 = vld [vmem:[#allocation8 + $0x86] ss:$0 sm:$0xff] }
 0x711   :  { %1390 = vmatprep.subr.mxu0 %v1607_v11 }
 0x713   :  { %v699_v31 = vpop.permute.xlu1 %698 }
 0x716   :  { %v1499_v29 = vpop.eup %1498 }
 0x717   :  { %v530_v30 = vmul.f32 %v1499_v29, %v1495_v21  ;;  %v1501_v33 = vpop.eup %1500  ;;  %v866_v36 = vpop.permute.xlu1 %865  ;;  %v1075_v21 = vld [vmem:[#allocation8 + $0x70] sm:$0xff] }
 0x718   :  { %v697_v34 = vmul.f32 %v1501_v33, %v1493_v15 }
 0x719   :  { %1383 = vmatmul.mubr.msk.f32.vlgmr.msra.gmra.mrb[8].mxu0 %vm364_vm9, %v530_v30 }
 0x71a   :  { %1391 = vmatpush3.msk.msra.mxu0 %vm368_vm7, %v699_v31  ;;  %1392 = vmatprep.mubr.msk.f32.mxu0 %vm1608_vm1, %v1607_v11  ;;  %v1503_v35 = vpop.eup %1502 }
 0x71b   :  { %1400 = vmatprep.subr.mxu0 %v1607_v11  ;;  %v864_v37 = vmul.f32 %v1503_v35, %v1497_v23  ;;  %v1460_v23 = vpack.c.bf16 %v1076_v22, %v1075_v21 }
 0x71d   :  { %1393 = vmatmul.mubr.msk.f32.vlgmr.msra.gmra.mrb[10].mxu0 %vm364_vm9, %v697_v34 }
 0x71e   :  { %1401 = vmatpush3.msk.msra.mxu0 %vm368_vm7, %v866_v36  ;;  %1402 = vmatprep.mubr.msk.f32.mxu0 %vm1608_vm1, %v1607_v11 }
 0x71f   :  { %1450 = vmatprep.subr.bf16.mxu0 %v1609_v14 }
 0x721   :  { %1403 = vmatmul.mubr.msk.f32.vlgmr.msra.gmra.mrb[12].mxu0 %vm364_vm9, %v864_v37 }
 0x722   :  { %1424 = vmatprep.mubr.msk.f32.mxu0 %vm1608_vm1, %v1607_v11  ;;  %1452 = vmatpush3.bf16.msra.mxu0 %v1451_v5 }
 0x723   :  { %1453 = vmatprep.subr.bf16.mxu0 %v1609_v14 }
 0x7ec   :  { %v604_v44 = vpop.f32.mrb[8].mxu0 }
 0x7ed   :  { %947 = vrot.lane.b32.xlu1 %v604_v44, %s1605_s7  ;;  %v1384_v45 = vpop.f32.mrb[9].mxu0  ;;  %v1309_v44 = vld [vmem:[#allocation8 + $0x87] ss:$0 sm:$0xff]  ;;  %s1574_s7 = scalar_lea.vmem %s1268_s1, 64 }
 0x7ee   :  { %p1575_p10 = scmp.ne.s32.totalorder %s1268_s1, %s1574_s7  ;;  %p1580_p12 = scmp.lt.s32.totalorder %s1574_s7, %s1574_s7 }
 0x7f0   :  { %v771_v46 = vpop.f32.mrb[10].mxu0  ;;  %p1581_p13 = por %p1580_p12, %p1579_p11 }
 0x7f1   :  { %951 = vrot.lane.b32.xlu0 %v771_v46, %s1621_s4  ;;  %v1394_v47 = vpop.f32.mrb[11].mxu0  ;;  %v1310_v46 = vld [vmem:[#allocation8 + $0x88] ss:$0 sm:$0xff] }
 0x7f2   :  { %p1582_p0 = pnand %p1581_p13, %p1575_p10 }
 0x7f4   :  { %v938_v48 = vpop.f32.mrb[12].mxu0 }
 0x7f5   :  { %955 = vrot.lane.b32.xlu1 %v938_v48, %s1622_s5  ;;  %v1404_v49 = vpop.f32.mrb[13].mxu0 }
 0x85f   :  { %v948_v50 = vpop.permute.xlu1 %947 }
 0x860   :  { %v958_v52 = vsel %vm274_vm6, %v1754_v63, %v948_v50 }
 0x863   :  { %v952_v51 = vpop.permute.xlu0 %951 }
 0x864   :  { %v960_v53 = vsel %vm959_vm10, %v958_v52, %v952_v51 }
 0x867   :  { %v956_v54 = vpop.permute.xlu1 %955 }
 0x868   :  { %v962_v55 = vsel %vm961_vm11, %v960_v53, %v956_v54 }
 0x869   :  { %1414 = vmatmul.mubr.msk.f32.vlgmr.msra.gmra.mrb[6].mxu1 %vm197_vm5, %v962_v55 }
 0x86a   :  { %1435 = vmatprep.mubr.msk.f32.mxu1 %vm1608_vm1, %v1607_v11  ;;  %v1071_v11 = vld [vmem:[#allocation8 + $0x50] sm:$0xff] }
 0x86b   :  { %v1454_v7 = vpack.c.bf16 %v1072_v6, %v1071_v11 }
 0x86d   :  { %1455 = vmatpush3.bf16.msra.mxu0 %v1454_v7 }
 0x93c   :  { %v1037_v57 = vpop.f32.mrb[6].mxu1 }
 0x93d   :  { %v1038_v58 = vadd.f32 %v1301_v56, %v1037_v57  ;;  %v1415_v59 = vpop.f32.mrb[7].mxu1 }
 0x93f   :  { %v1041_v60 = vadd.f32 %v1038_v58, %v1707_v32  ;;  %v1073_v32 = vld [vmem:[#allocation8 + $0x60] sm:$0xff] }
 0x940   :  { %v1457_v9 = vpack.c.bf16 %v1074_v8, %v1073_v32 }
 0x941   :  { %v1045_v61 = vsel %vm1044_vm4, %v1041_v60, 0.0 }
 0x942   :  { %1046 = vadd.xlane.f32.xlu0 %v1045_v61  ;;  %1458 = vmatpush3.bf16.msra.mxu1 %v1457_v9 }
 0x943   :  { %1459 = vmatprep.subr.bf16.mxu1 %v1609_v14 }
 0x946   :  { %1461 = vmatpush3.bf16.msra.mxu1 %v1460_v23 }
 0x9cf   :  { %v1047_v62 = vpop.xlane.xlu0 %1046 }
 0x9d0   :  { %v1049_v0 = vmul.f32 0.03125, %v1047_v62 }
 0x9d2   :  { %v1050_v63 = vsub.f32 %v1041_v60, %v1049_v0 }
 0x9d4   :  { %v1051_v1 = vmul.f32 %v1050_v63, %v1050_v63 }
 0x9d6   :  { %v1052_v2 = vsel %vm1044_vm4, %v1051_v1, 0.0 }
 0x9d7   :  { %1053 = vadd.xlane.f32.xlu1 %v1052_v2 }
 0xa64   :  { %v1054_v10 = vpop.xlane.xlu1 %1053 }
 0xa65   :  { %v1055_v12 = vmul.f32 0.03125, %v1054_v10 }
 0xa67   :  { %v1056_v13 = vadd.f32 1e-05, %v1055_v12 }
 0xa69   :  { %1504 = vrsqrt.f32 %v1056_v13 }
 0xa73   :  { %v1505_v15 = vpop.eup %1504 }
 0xa74   :  { %v1058_v17 = vmul.f32 %v1505_v15, %v1050_v63 }
 0xa76   :  { %v1063_v19 = vmul.f32 %v1303_v16, %v1058_v17 }
 0xa78   :  { %v1068_v20 = vadd.f32 %v1304_v18, %v1063_v19 }
 0xa7a   :  { %1425 = vmatmul.mubr.msk.f32.vlgmr.msra.gmra.mrb[14].mxu0 %vm197_vm5, %v1068_v20 }
 0xb4d   :  { %v1151_v25 = vpop.f32.mrb[14].mxu0 }
 0xb4e   :  { %v1152_v26 = vadd.f32 %v1305_v24, %v1151_v25  ;;  %v1426_v14 = vpop.f32.mrb[15].mxu0 }
 0xb50   :  { %v1155_v27 = vmax.f32 %v1152_v26, 0.0 }
 0xb52   :  { %1436 = vmatmul.mubr.msk.f32.vlgmr.msra.gmra.mrb[8].mxu1 %vm197_vm5, %v1155_v27 }
 0xc25   :  { %v1230_v29 = vpop.f32.mrb[8].mxu1 }
 0xc26   :  { %v1231_v30 = vadd.f32 %v1307_v28, %v1230_v29  ;;  %v1437_v31 = vpop.f32.mrb[9].mxu1 }
 0xc28   :  { %v1234_v33 = vadd.f32 %v1231_v30, %v1068_v20 }
 0xc2a   :  { %v1237_v34 = vsel %vm1044_vm4, %v1234_v33, 0.0 }
 0xc2b   :  { %1238 = vadd.xlane.f32.xlu0 %v1237_v34 }
 0xcb8   :  { %v1239_v35 = vpop.xlane.xlu0 %1238 }
 0xcb9   :  { %v1240_v36 = vmul.f32 0.03125, %v1239_v35 }
 0xcbb   :  { %v1241_v37 = vsub.f32 %v1234_v33, %v1240_v36 }
 0xcbd   :  { %v1242_v38 = vmul.f32 %v1241_v37, %v1241_v37 }
 0xcbf   :  { %v1243_v39 = vsel %vm1044_vm4, %v1242_v38, 0.0 }
 0xcc0   :  { %1244 = vadd.xlane.f32.xlu0 %v1243_v39 }
 0xd4d   :  { %v1245_v40 = vpop.xlane.xlu0 %1244 }
 0xd4e   :  { %v1246_v41 = vmul.f32 0.03125, %v1245_v40 }
 0xd50   :  { %v1247_v42 = vadd.f32 1e-05, %v1246_v41 }
 0xd52   :  { %1506 = vrsqrt.f32 %v1247_v42 }
 0xd5c   :  { %v1507_v43 = vpop.eup %1506 }
 0xd5d   :  { %v1249_v45 = vmul.f32 %v1507_v43, %v1241_v37 }
 0xd5f   :  { %v1254_v47 = vmul.f32 %v1309_v44, %v1249_v45 }
 0xd61   :  { %v1259_v48 = vadd.f32 %v1310_v46, %v1254_v47 }
 0xd63   :  { %1261 = vst.msk [vmem:[#allocation9 + $0x2] sm:$0x3] %vm1044_vm4, %v1259_v48 }
 0xd64   :  { %1585 = shalt.err (!%p1582_p0)
}
 0xd65   :  { %s1586_s10 = scalar_lea.hbm %s1812_s3, 64 }
 0xd66   :  { %p1587_p1 = scmp.ne.s32.totalorder %s1812_s3, %s1586_s10  ;;  %p1590_p2 = scmp.lt.u32.totalorder %s1586_s10, %s1812_s3 }
 0xd68   :  { %p1592_p3 = pnand %p1590_p2, %p1587_p1 }
 0xd6a   :  { %1595 = shalt.err (!%p1592_p3)
}
 0xd6b   :  { %s1624_s16 = smov 32   ;;  %s1625_s17 = smov 2  }
 0xd6c   :  { %1273 = dma.vmem_to_hbm [thread:$0]  %s1268_s1, 64, %s1812_s3, [#allocation5], %s1624_s16, %s1624_s16, %s1625_s17  }
 0xd6d   :  { %1600 = dma.done.wait [#allocation5], 64  }
 0xd6e   :  { %1601 = vsyncadd [#allocation5], 4294967232 }
 0xd6f   :  { %1277 = vsyncpa [#allocation4], 1 }
 0xd70   :  { %1278 = vsyncpa [#allocation7], 1 }
 0xd71   :  { %1279 = vsyncpa [#allocation5], 1 }

</bundles_post_ra>
